<compile_context>
chip_gen: v7x
topology: tpu7x:2x2x1
jax: 0.10.0
libtpu: 0.0.40
codegen_flags: <defaults>
</compile_context>

<pallas_src>
import functools

import jax
import jax.numpy as jnp
from jax.experimental import pallas as pl
from jax.experimental.pallas import tpu as pltpu


def _round_up(x, m):
    return (x + m - 1) // m * m


# ----------------------------------------------------------------------------
# Kernel: whole decode sequence in one invocation (grid=(1,)).
# ----------------------------------------------------------------------------
def decoder_kernel(emb_ref, h0_ref, wih_ref, whh_ref, bih_ref, bhh_ref,
                   wout_ref, bout_ref, logp_ref, hout_ref, gi_ref, hall_ref,
                   *, T, Hp):
    # Phase 1: input-side GRU gate pre-activations for ALL steps at once.
    # gi columns are [r | z | n] blocks, each a full 128-lane tile.
    gi_ref[...] = jnp.dot(emb_ref[...], wih_ref[...],
                          preferred_element_type=jnp.float32) + bih_ref[...]

    # Zero the hidden-state history scratch so the batched projection never sees
    # uninitialized VMEM in the sublane-pad rows.
    hall_ref[...] = jnp.zeros_like(hall_ref)

    whh = whh_ref[...]
    bhh = bhh_ref[...]

    # Phase 2: serial recurrence. Only h @ W_hh remains on the serial path.
    def step(t, h):
        gh = jnp.dot(h.astype(whh.dtype), whh,
                     preferred_element_type=jnp.float32) + bhh        # (1, 3*Hp)
        gi = gi_ref[pl.ds(t, 1), :]                                   # (1, 3*Hp)
        # torch.nn.GRU gate order: r, z, n
        r = jax.nn.sigmoid(gi[:, 0:Hp] + gh[:, 0:Hp])
        z = jax.nn.sigmoid(gi[:, Hp:2 * Hp] + gh[:, Hp:2 * Hp])
        n = jnp.tanh(gi[:, 2 * Hp:3 * Hp] + r * gh[:, 2 * Hp:3 * Hp])
        h_new = (1.0 - z) * n + z * h                                 # (1, Hp)
        hall_ref[pl.ds(t, 1), :] = h_new
        return h_new

    h_final = jax.lax.fori_loop(0, T, step, h0_ref[...], unroll=True)
    hout_ref[...] = h_final

    # Phase 3: batched output projection + row-wise LogSoftmax(dim=1).
    # Padded vocab lanes carry zero weight columns and a -1e30 bias, so they drop
    # out of the max / sum. Store is sublane+lane dense.
    logits = jnp.dot(hall_ref[...].astype(wout_ref.dtype), wout_ref[...],
                     preferred_element_type=jnp.float32) + bout_ref[...]
    m = jnp.max(logits, axis=-1, keepdims=True)
    lse = m + jnp.log(jnp.sum(jnp.exp(logits - m), axis=-1, keepdims=True))
    logp_ref[...] = logits - lse


# ----------------------------------------------------------------------------
# Wrappers
# ----------------------------------------------------------------------------
def decoder_decode(token_ids, hidden, packed):
    """Teacher-forced decode of T steps inside ONE pallas_call.

    token_ids: (T,) int32.  hidden: (1, 1, H) f32.
    Returns (logp (T, O) f32, hidden (1, 1, H) f32).
    """
    H, O = packed["H"], packed["O"]
    Hp, Op = packed["Hp"], packed["Op"]
    T = int(token_ids.shape[0])
    Tp = _round_up(T, 8)

    # One-time gather of all T embedding rows (weight dtype), padded to Tp sublanes.
    ids = jnp.clip(token_ids.astype(jnp.int32), 0, O - 1)
    emb_rows = jnp.take(packed["embedding"], ids, axis=0)             # (T, Hp)
    emb_seq = jnp.zeros((Tp, Hp), packed["embedding"].dtype).at[:T].set(emb_rows)

    h0 = jnp.zeros((1, Hp), jnp.float32).at[:, :H].set(
        hidden.reshape(1, H).astype(jnp.float32))

    kernel = functools.partial(decoder_kernel, T=T, Hp=Hp)

    logp_pad, h_pad = pl.pallas_call(
        kernel,
        grid=(1,),
        in_specs=[
            pl.BlockSpec((Tp, Hp), lambda i: (0, 0)),          # gathered embeddings
            pl.BlockSpec((1, Hp), lambda i: (0, 0)),            # h0
            pl.BlockSpec((Hp, 3 * Hp), lambda i: (0, 0)),       # W_ih (fused gates)
            pl.BlockSpec((Hp, 3 * Hp), lambda i: (0, 0)),       # W_hh (fused gates)
            pl.BlockSpec((1, 3 * Hp), lambda i: (0, 0)),         # b_ih
            pl.BlockSpec((1, 3 * Hp), lambda i: (0, 0)),         # b_hh
            pl.BlockSpec((Hp, Op), lambda i: (0, 0)),            # W_out^T
            pl.BlockSpec((1, Op), lambda i: (0, 0)),             # b_out
        ],
        out_specs=(
            pl.BlockSpec((Tp, Op), lambda i: (0, 0)),            # per-step logp
            pl.BlockSpec((1, Hp), lambda i: (0, 0)),             # final hidden
        ),
        out_shape=(
            jax.ShapeDtypeStruct((Tp, Op), jnp.float32),
            jax.ShapeDtypeStruct((1, Hp), jnp.float32),
        ),
        scratch_shapes=[
            pltpu.VMEM((Tp, 3 * Hp), jnp.float32),   # precomputed input gates gi
            pltpu.VMEM((Tp, Hp), jnp.float32),       # per-step hidden states
        ],
        compiler_params=pltpu.CompilerParams(
            dimension_semantics=("arbitrary",)),
    )(emb_seq, h0, packed["w_ih"], packed["w_hh"], packed["b_ih"],
      packed["b_hh"], packed["w_out"], packed["b_out"])

    return logp_pad[:T, :O], h_pad[:, :H].reshape(1, 1, H)


def decoder_forward(x_idx, hidden, packed):
    """Exactly the PyTorch Decoder.forward: one token -> (logp (1,O), hidden (1,1,H))."""
    token_ids = jnp.asarray(x_idx, jnp.int32).reshape(1)
    logp, h_new = decoder_decode(token_ids, hidden, packed)
    return logp, h_new


# ----------------------------------------------------------------------------
# Parameters (PyTorch layout) and packing into the lane-padded kernel layout
# ----------------------------------------------------------------------------
def init_params(key, hidden_size, output_size):
    ks = jax.random.split(key, 7)
    s = 1.0 / jnp.sqrt(hidden_size)
    return {
        "hidden_size": hidden_size,
        "output_size": output_size,
        # nn.Embedding(output_size, hidden_size)
        "embedding": jax.random.normal(ks[0], (output_size, hidden_size), jnp.float32),
        # nn.GRU(hidden_size, hidden_size): torch layout (3H, H) / (3H,), gate order r,z,n
        "w_ih": jax.random.uniform(ks[1], (3 * hidden_size, hidden_size), jnp.float32, -s, s),
        "w_hh": jax.random.uniform(ks[2], (3 * hidden_size, hidden_size), jnp.float32, -s, s),
        "b_ih": jax.random.uniform(ks[3], (3 * hidden_size,), jnp.float32, -s, s),
        "b_hh": jax.random.uniform(ks[4], (3 * hidden_size,), jnp.float32, -s, s),
        # nn.Linear(hidden_size, output_size): torch layout (O, H) / (O,)
        "w_out": jax.random.uniform(ks[5], (output_size, hidden_size), jnp.float32, -s, s),
        "b_out": jax.random.uniform(ks[6], (output_size,), jnp.float32, -s, s),
    }


def pack_decoder_params(p, dtype=jnp.bfloat16):
    """Lane-pad + fuse torch-layout params. Matmul weights in `dtype`, biases f32."""
    H = p["hidden_size"]
    O = p["output_size"]
    Hp = _round_up(H, 128)
    Op = _round_up(O, 128)

    def split3(w):  # (3H, H) -> (r, z, n) each (H, H)
        return w[0:H], w[H:2 * H], w[2 * H:3 * H]

    def fuse_w(w3):
        wr, wz, wn = split3(w3)
        w = jnp.zeros((Hp, 3 * Hp), jnp.float32)
        w = w.at[0:H, 0:H].set(wr.T)
        w = w.at[0:H, Hp:Hp + H].set(wz.T)
        w = w.at[0:H, 2 * Hp:2 * Hp + H].set(wn.T)
        return w.astype(dtype)

    def fuse_b(b):
        v = jnp.zeros((1, 3 * Hp), jnp.float32)
        v = v.at[0, 0:H].set(b[0:H])
        v = v.at[0, Hp:Hp + H].set(b[H:2 * H])
        v = v.at[0, 2 * Hp:2 * Hp + H].set(b[2 * H:3 * H])
        return v

    emb_p = jnp.zeros((O, Hp), jnp.float32).at[:, 0:H].set(p["embedding"]).astype(dtype)
    w_out_p = jnp.zeros((Hp, Op), jnp.float32).at[0:H, 0:O].set(p["w_out"].T).astype(dtype)
    # Padded vocab lanes get a huge negative f32 bias so log-softmax ignores them.
    b_out_p = jnp.full((1, Op), -1e30, jnp.float32).at[0, 0:O].set(p["b_out"])

    return {"H": H, "O": O, "Hp": Hp, "Op": Op,
            "embedding": emb_p,
            "w_ih": fuse_w(p["w_ih"]), "w_hh": fuse_w(p["w_hh"]),
            "b_ih": fuse_b(p["b_ih"]), "b_hh": fuse_b(p["b_hh"]),
            "w_out": w_out_p, "b_out": b_out_p}


# ----------------------------------------------------------------------------
# Pure-JAX reference mirroring the PyTorch module
# ----------------------------------------------------------------------------
def reference_forward(x_idx, hidden, p):
    H = p["hidden_size"]
    emb = p["embedding"][x_idx].reshape(1, H)
    h = hidden.reshape(1, H)
    gi = emb @ p["w_ih"].T + p["b_ih"]
    gh = h @ p["w_hh"].T + p["b_hh"]
    r = jax.nn.sigmoid(gi[:, 0:H] + gh[:, 0:H])
    z = jax.nn.sigmoid(gi[:, H:2 * H] + gh[:, H:2 * H])
    n = jnp.tanh(gi[:, 2 * H:3 * H] + r * gh[:, 2 * H:3 * H])
    h_new = (1.0 - z) * n + z * h
    logits = h_new @ p["w_out"].T + p["b_out"]
    logp = jax.nn.log_softmax(logits, axis=1)
    return logp, h_new.reshape(1, 1, H)


def reference_decode(token_ids, hidden, p):
    logps, h = [], hidden
    for i in range(token_ids.shape[0]):
        lp, h = reference_forward(token_ids[i], h, p)
        logps.append(lp)
    return jnp.concatenate(logps, axis=0), h


if __name__ == "__main__":
    hidden_size = 32
    output_size = 16

    key = jax.random.PRNGKey(0)
    kp, kh, kx = jax.random.split(key, 3)

    params = init_params(kp, hidden_size, output_size)
    hidden = jax.random.normal(kh, (1, 1, hidden_size), jnp.float32)

    packed_f32 = pack_decoder_params(params, dtype=jnp.float32)
    packed_bf16 = pack_decoder_params(params, dtype=jnp.bfloat16)

    # 1) Single-step forward (f32 weights) -- exact PyTorch Decoder.forward semantics.
    x_idx = jnp.int32(jax.random.randint(kx, (), 0, output_size))
    logp, h_new = decoder_forward(x_idx, hidden, packed_f32)
    jax.block_until_ready((logp, h_new))

    logp_ref, h_ref = reference_forward(x_idx, hidden, params)
    assert logp.shape == (1, output_size) and h_new.shape == (1, 1, hidden_size)
    assert jnp.allclose(logp, logp_ref, atol=1e-4), "single-step log-softmax mismatch"
    assert jnp.allclose(h_new, h_ref, atol=1e-4), "single-step hidden mismatch"

    # 2) Multi-step teacher-forced decode (f32 weights): whole loop in ONE pallas_call.
    T = 6
    token_ids = jax.random.randint(kx, (T,), 0, output_size, dtype=jnp.int32)
    logp_seq, h_seq = decoder_decode(token_ids, hidden, packed_f32)
    jax.block_until_ready((logp_seq, h_seq))

    logp_seq_ref, h_seq_ref = reference_decode(token_ids, hidden, params)
    assert logp_seq.shape == (T, output_size)
    assert jnp.allclose(logp_seq, logp_seq_ref, atol=1e-4), "multi-step log-softmax mismatch"
    assert jnp.allclose(h_seq, h_seq_ref, atol=1e-4), "multi-step hidden mismatch"

    # 3) bf16-weight fast path (halved weight DMA / resident VMEM). Gate math, biases,
    #    logits and log-softmax stay f32; looser tolerance is inherent to bf16 weights.
    logp_bf, h_bf = decoder_decode(token_ids, hidden, packed_bf16)
    jax.block_until_ready((logp_bf, h_bf))
    assert jnp.allclose(logp_bf, logp_seq_ref, atol=5e-2), "bf16 log-softmax mismatch"
    assert jnp.allclose(h_bf, h_seq_ref, atol=5e-2), "bf16 hidden mismatch"

    print("KERNEL_OK")
</pallas_src>

<mosaic_0001>
module attributes {stable_mosaic.version = 11 : i64} {
  func.func @decoder_kernel(%arg0: i32, %arg1: memref<8x128xf32, #tpu.memory_space<vmem>>, %arg2: memref<1x128xf32, #tpu.memory_space<vmem>>, %arg3: memref<128x384xf32, #tpu.memory_space<vmem>>, %arg4: memref<128x384xf32, #tpu.memory_space<vmem>>, %arg5: memref<1x384xf32, #tpu.memory_space<vmem>>, %arg6: memref<1x384xf32, #tpu.memory_space<vmem>>, %arg7: memref<128x128xf32, #tpu.memory_space<vmem>>, %arg8: memref<1x128xf32, #tpu.memory_space<vmem>>, %arg9: memref<8x128xf32, #tpu.memory_space<vmem>>, %arg10: memref<1x128xf32, #tpu.memory_space<vmem>>, %arg11: memref<8x384xf32, #tpu.memory_space<vmem>>, %arg12: memref<8x128xf32, #tpu.memory_space<vmem>>) attributes {dimension_semantics = [#tpu.dimension_semantics<arbitrary>], iteration_bounds = array<i64: 1>, scalar_prefetch = 0 : i64, scratch_operands = 2 : i64, tpu.core_type = #tpu.core_type<tc>, window_params = [{pipeline_mode = #tpu.pipeline_mode<synchronous>, transform_indices = @transform_0, window_bounds = array<i64: 8, 128>}, {pipeline_mode = #tpu.pipeline_mode<synchronous>, transform_indices = @transform_1, window_bounds = array<i64: 1, 128>}, {pipeline_mode = #tpu.pipeline_mode<synchronous>, transform_indices = @transform_2, window_bounds = array<i64: 128, 384>}, {pipeline_mode = #tpu.pipeline_mode<synchronous>, transform_indices = @transform_3, window_bounds = array<i64: 128, 384>}, {pipeline_mode = #tpu.pipeline_mode<synchronous>, transform_indices = @transform_4, window_bounds = array<i64: 1, 384>}, {pipeline_mode = #tpu.pipeline_mode<synchronous>, transform_indices = @transform_5, window_bounds = array<i64: 1, 384>}, {pipeline_mode = #tpu.pipeline_mode<synchronous>, transform_indices = @transform_6, window_bounds = array<i64: 128, 128>}, {pipeline_mode = #tpu.pipeline_mode<synchronous>, transform_indices = @transform_7, window_bounds = array<i64: 1, 128>}, {pipeline_mode = #tpu.pipeline_mode<synchronous>, transform_indices = @transform_8, window_bounds = array<i64: 8, 128>}, {pipeline_mode = #tpu.pipeline_mode<synchronous>, transform_indices = @transform_9, window_bounds = array<i64: 1, 128>}]} {
    %c0 = arith.constant 0 : index
    %c0_0 = arith.constant 0 : index
    %0 = vector.load %arg1[%c0, %c0_0] : memref<8x128xf32, #tpu.memory_space<vmem>>, vector<8x128xf32>
    %c0_1 = arith.constant 0 : index
    %c0_2 = arith.constant 0 : index
    %1 = vector.load %arg3[%c0_1, %c0_2] : memref<128x384xf32, #tpu.memory_space<vmem>>, vector<128x384xf32>
    %cst = arith.constant dense<0.000000e+00> : vector<8x384xf32>
    %2 = tpu.matmul %0, %1, %cst {dimension_numbers = #tpu.dot_dimension_numbers<[1], [0], [0], [1], [0, 0, 1, 1], [], []>} : vector<8x128xf32>, vector<128x384xf32>, vector<8x384xf32> -> vector<8x384xf32>
    %c0_3 = arith.constant 0 : index
    %c0_4 = arith.constant 0 : index
    %3 = vector.load %arg5[%c0_3, %c0_4] : memref<1x384xf32, #tpu.memory_space<vmem>>, vector<1x384xf32>
    %4 = vector.broadcast %3 : vector<1x384xf32> to vector<8x384xf32>
    %5 = arith.addf %2, %4 : vector<8x384xf32>
    %c0_5 = arith.constant 0 : index
    %c0_6 = arith.constant 0 : index
    %6 = vector.load %arg11[%c0_5, %c0_6] : memref<8x384xf32, #tpu.memory_space<vmem>>, vector<8x384xf32>
    tpu.vector_store %arg11[%c0_5, %c0_6], %5 {strides = array<i32>} : memref<8x384xf32, #tpu.memory_space<vmem>>, vector<8x384xf32>,
    %cst_7 = arith.constant 0.000000e+00 : f32
    %7 = vector.broadcast %cst_7 : f32 to vector<8x128xf32>
    %c0_8 = arith.constant 0 : index
    %c0_9 = arith.constant 0 : index
    %8 = vector.load %arg12[%c0_8, %c0_9] : memref<8x128xf32, #tpu.memory_space<vmem>>, vector<8x128xf32>
    tpu.vector_store %arg12[%c0_8, %c0_9], %7 {strides = array<i32>} : memref<8x128xf32, #tpu.memory_space<vmem>>, vector<8x128xf32>,
    %c0_10 = arith.constant 0 : index
    %c0_11 = arith.constant 0 : index
    %9 = vector.load %arg4[%c0_10, %c0_11] : memref<128x384xf32, #tpu.memory_space<vmem>>, vector<128x384xf32>
    %c0_12 = arith.constant 0 : index
    %c0_13 = arith.constant 0 : index
    %10 = vector.load %arg6[%c0_12, %c0_13] : memref<1x384xf32, #tpu.memory_space<vmem>>, vector<1x384xf32>
    %c0_14 = arith.constant 0 : index
    %c0_15 = arith.constant 0 : index
    %11 = vector.load %arg2[%c0_14, %c0_15] : memref<1x128xf32, #tpu.memory_space<vmem>>, vector<1x128xf32>
    %c0_i32 = arith.constant 0 : i32
    %cst_16 = arith.constant dense<0.000000e+00> : vector<1x384xf32>
    %12 = tpu.matmul %11, %9, %cst_16 {dimension_numbers = #tpu.dot_dimension_numbers<[1], [0], [0], [1], [0, 0, 1, 1], [], []>} : vector<1x128xf32>, vector<128x384xf32>, vector<1x384xf32> -> vector<1x384xf32>
    %13 = arith.addf %12, %10 : vector<1x384xf32>
    %14 = arith.index_cast %c0_i32 : i32 to index
    %c0_17 = arith.constant 0 : index
    %15 = vector.load %arg11[%14, %c0_17] : memref<8x384xf32, #tpu.memory_space<vmem>>, vector<1x384xf32>
    %16 = vector.extract_strided_slice %15 {offsets = [0, 0], sizes = [1, 128], strides = [1, 1]} : vector<1x384xf32> to vector<1x128xf32>
    %17 = vector.extract_strided_slice %13 {offsets = [0, 0], sizes = [1, 128], strides = [1, 1]} : vector<1x384xf32> to vector<1x128xf32>
    %18 = arith.addf %16, %17 : vector<1x128xf32>
    %19 = arith.negf %18 : vector<1x128xf32>
    %20 = math.exp %19 : vector<1x128xf32>
    %cst_18 = arith.constant 1.000000e+00 : f32
    %21 = vector.broadcast %cst_18 : f32 to vector<1x128xf32>
    %22 = arith.addf %21, %20 : vector<1x128xf32>
    %23 = arith.divf %21, %22 : vector<1x128xf32>
    %24 = vector.extract_strided_slice %15 {offsets = [0, 128], sizes = [1, 128], strides = [1, 1]} : vector<1x384xf32> to vector<1x128xf32>
    %25 = vector.extract_strided_slice %13 {offsets = [0, 128], sizes = [1, 128], strides = [1, 1]} : vector<1x384xf32> to vector<1x128xf32>
    %26 = arith.addf %24, %25 : vector<1x128xf32>
    %27 = arith.negf %26 : vector<1x128xf32>
    %28 = math.exp %27 : vector<1x128xf32>
    %cst_19 = arith.constant 1.000000e+00 : f32
    %29 = vector.broadcast %cst_19 : f32 to vector<1x128xf32>
    %30 = arith.addf %29, %28 : vector<1x128xf32>
    %31 = arith.divf %29, %30 : vector<1x128xf32>
    %32 = vector.extract_strided_slice %15 {offsets = [0, 256], sizes = [1, 128], strides = [1, 1]} : vector<1x384xf32> to vector<1x128xf32>
    %33 = vector.extract_strided_slice %13 {offsets = [0, 256], sizes = [1, 128], strides = [1, 1]} : vector<1x384xf32> to vector<1x128xf32>
    %34 = arith.mulf %23, %33 : vector<1x128xf32>
    %35 = arith.addf %32, %34 : vector<1x128xf32>
    %36 = math.tanh %35 : vector<1x128xf32>
    %cst_20 = arith.constant 1.000000e+00 : f32
    %37 = vector.broadcast %cst_20 : f32 to vector<1x128xf32>
    %38 = arith.subf %37, %31 : vector<1x128xf32>
    %39 = arith.mulf %38, %36 : vector<1x128xf32>
    %40 = arith.mulf %31, %11 : vector<1x128xf32>
    %41 = arith.addf %39, %40 : vector<1x128xf32>
    %42 = arith.index_cast %c0_i32 : i32 to index
    %c0_21 = arith.constant 0 : index
    %43 = vector.load %arg12[%42, %c0_21] : memref<8x128xf32, #tpu.memory_space<vmem>>, vector<1x128xf32>
    tpu.vector_store %arg12[%42, %c0_21], %41 {strides = array<i32>} : memref<8x128xf32, #tpu.memory_space<vmem>>, vector<1x128xf32>,
    %c1_i32 = arith.constant 1 : i32
    %c0_22 = arith.constant 0 : index
    %c0_23 = arith.constant 0 : index
    %44 = vector.load %arg10[%c0_22, %c0_23] : memref<1x128xf32, #tpu.memory_space<vmem>>, vector<1x128xf32>
    tpu.vector_store %arg10[%c0_22, %c0_23], %41 {strides = array<i32>} : memref<1x128xf32, #tpu.memory_space<vmem>>, vector<1x128xf32>,
    %c0_24 = arith.constant 0 : index
    %c0_25 = arith.constant 0 : index
    %45 = vector.load %arg12[%c0_24, %c0_25] : memref<8x128xf32, #tpu.memory_space<vmem>>, vector<8x128xf32>
    %c0_26 = arith.constant 0 : index
    %c0_27 = arith.constant 0 : index
    %46 = vector.load %arg7[%c0_26, %c0_27] : memref<128x128xf32, #tpu.memory_space<vmem>>, vector<128x128xf32>
    %cst_28 = arith.constant dense<0.000000e+00> : vector<8x128xf32>
    %47 = tpu.matmul %45, %46, %cst_28 {dimension_numbers = #tpu.dot_dimension_numbers<[1], [0], [0], [1], [0, 0, 1, 1], [], []>} : vector<8x128xf32>, vector<128x128xf32>, vector<8x128xf32> -> vector<8x128xf32>
    %c0_29 = arith.constant 0 : index
    %c0_30 = arith.constant 0 : index
    %48 = vector.load %arg8[%c0_29, %c0_30] : memref<1x128xf32, #tpu.memory_space<vmem>>, vector<1x128xf32>
    %49 = vector.broadcast %48 : vector<1x128xf32> to vector<8x128xf32>
    %50 = arith.addf %47, %49 : vector<8x128xf32>
    %cst_31 = arith.constant dense<0xFF800000> : vector<8xf32>
    %51 = vector.multi_reduction <maximumf>, %50, %cst_31 [1] : vector<8x128xf32> to vector<8xf32>
    %52 = vector.shape_cast %51 : vector<8xf32> to vector<8x1xf32>
    %53 = vector.broadcast %52 : vector<8x1xf32> to vector<8x128xf32>
    %54 = arith.subf %50, %53 : vector<8x128xf32>
    %55 = math.exp %54 : vector<8x128xf32>
    %cst_32 = arith.constant dense<0.000000e+00> : vector<8xf32>
    %56 = vector.multi_reduction <add>, %55, %cst_32 [1] : vector<8x128xf32> to vector<8xf32>
    %57 = vector.shape_cast %56 : vector<8xf32> to vector<8x1xf32>
    %58 = math.log %57 : vector<8x1xf32>
    %59 = arith.addf %52, %58 : vector<8x1xf32>
    %60 = vector.broadcast %59 : vector<8x1xf32> to vector<8x128xf32>
    %61 = arith.subf %50, %60 : vector<8x128xf32>
    %c0_33 = arith.constant 0 : index
    %c0_34 = arith.constant 0 : index
    %62 = vector.load %arg9[%c0_33, %c0_34] : memref<8x128xf32, #tpu.memory_space<vmem>>, vector<8x128xf32>
    tpu.vector_store %arg9[%c0_33, %c0_34], %61 {strides = array<i32>} : memref<8x128xf32, #tpu.memory_space<vmem>>, vector<8x128xf32>,
    return
  }
  func.func @transform_0(%arg0: i32) -> (i32, i32) {
    %c0_i32 = arith.constant 0 : i32
    %c0_i32_0 = arith.constant 0 : i32
    %c0_i32_1 = arith.constant 0 : i32
    return %c0_i32, %c0_i32_0 : i32, i32
  }
  func.func @transform_1(%arg0: i32) -> (i32, i32) {
    %c0_i32 = arith.constant 0 : i32
    %c0_i32_0 = arith.constant 0 : i32
    %c0_i32_1 = arith.constant 0 : i32
    return %c0_i32, %c0_i32_0 : i32, i32
  }
  func.func @transform_2(%arg0: i32) -> (i32, i32) {
    %c0_i32 = arith.constant 0 : i32
    %c0_i32_0 = arith.constant 0 : i32
    %c0_i32_1 = arith.constant 0 : i32
    return %c0_i32, %c0_i32_0 : i32, i32
  }
  func.func @transform_3(%arg0: i32) -> (i32, i32) {
    %c0_i32 = arith.constant 0 : i32
    %c0_i32_0 = arith.constant 0 : i32
    %c0_i32_1 = arith.constant 0 : i32
    return %c0_i32, %c0_i32_0 : i32, i32
  }
  func.func @transform_4(%arg0: i32) -> (i32, i32) {
    %c0_i32 = arith.constant 0 : i32
    %c0_i32_0 = arith.constant 0 : i32
    %c0_i32_1 = arith.constant 0 : i32
    return %c0_i32, %c0_i32_0 : i32, i32
  }
  func.func @transform_5(%arg0: i32) -> (i32, i32) {
    %c0_i32 = arith.constant 0 : i32
    %c0_i32_0 = arith.constant 0 : i32
    %c0_i32_1 = arith.constant 0 : i32
    return %c0_i32, %c0_i32_0 : i32, i32
  }
  func.func @transform_6(%arg0: i32) -> (i32, i32) {
    %c0_i32 = arith.constant 0 : i32
    %c0_i32_0 = arith.constant 0 : i32
    %c0_i32_1 = arith.constant 0 : i32
    return %c0_i32, %c0_i32_0 : i32, i32
  }
  func.func @transform_7(%arg0: i32) -> (i32, i32) {
    %c0_i32 = arith.constant 0 : i32
    %c0_i32_0 = arith.constant 0 : i32
    %c0_i32_1 = arith.constant 0 : i32
    return %c0_i32, %c0_i32_0 : i32, i32
  }
  func.func @transform_8(%arg0: i32) -> (i32, i32) {
    %c0_i32 = arith.constant 0 : i32
    %c0_i32_0 = arith.constant 0 : i32
    %c0_i32_1 = arith.constant 0 : i32
    return %c0_i32, %c0_i32_0 : i32, i32
  }
  func.func @transform_9(%arg0: i32) -> (i32, i32) {
    %c0_i32 = arith.constant 0 : i32
    %c0_i32_0 = arith.constant 0 : i32
    %c0_i32_1 = arith.constant 0 : i32
    return %c0_i32, %c0_i32_0 : i32, i32
  }
}

</mosaic_0001>

<bundles_post_ra>
// kernel: tpu_custom_call.1
= control target key start
LH: loop header
LB: loop body
LE: loop exit
PB: predicated region body
PF: predicated region fallthrough
CT: control target
= control target key end

     0   :  { %15 = vsyncpa [#allocation5], 0  ;;  %s1325_s0 = inlined_call_operand.hbm [shape: f32[8,128], index: 0, kind: input, shape index: {}]   ;;  %s1326_s1 = inlined_call_operand.vmem [shape: f32[1,128], index: 1, kind: input, shape index: {}]   ;;  %s1327_s2 = inlined_call_operand.hbm [shape: f32[128,384], index: 2, kind: input, shape index: {}]   ;;  %s1328_s3 = inlined_call_operand.hbm [shape: f32[128,384], index: 3, kind: input, shape index: {}]   ;;  %s1329_s4 = inlined_call_operand.vmem [shape: f32[1,384], index: 4, kind: input, shape index: {}]   ;;  %s1330_s5 = inlined_call_operand.vmem [shape: f32[1,384], index: 5, kind: input, shape index: {}]   ;;  %s1331_s6 = inlined_call_operand.hbm [shape: f32[128,128], index: 6, kind: input, shape index: {}]   ;;  %s1332_s7 = inlined_call_operand.vmem [shape: f32[1,128], index: 7, kind: input, shape index: {}]   ;;  %s1333_s8 = inlined_call_operand.hbm [shape: f32[8,128], index: 8, kind: output, shape index: {0}]   ;;  %s1334_s9 = inlined_call_operand.hbm [shape: f32[1,128], index: 9, kind: output, shape index: {1}]  }
   0x1   :  { %16 = vsyncpa [#allocation8], 0 }
   0x2   :  { %17 = vsyncpa [#allocation11], 0 }
   0x3   :  { %18 = vsyncpa [#allocation6], 0 }
   0x4   :  { %19 = vsyncpa [#allocation14], 0  ;;  %s1134_s30 = smov [#allocation7]   ;;  %s992_s13 = scalar_lea.hbm %s1327_s2, 6144 }
   0x5   :  { %s37_s10 = sshll.u32 %s1134_s30, 4  ;;  %p993_p0 = scmp.ne.s32.totalorder %s1327_s2, %s992_s13  ;;  %s38_s10 = int_to_ptr.vmem [resolvable:$true] %s37_s10 }
   0x6   :  { %p996_p1 = scmp.lt.u32.totalorder %s992_s13, %s1327_s2 }
   0x8   :  { %p998_p2 = pnand %p996_p1, %p993_p0 }
   0xa   :  { %1001 = shalt.err (!%p998_p2)
}
   0xb   :  { %s1002_s18 = scalar_lea.vmem %s38_s10, 6144  ;;  %p1007_p4 = scmp.lt.s32.totalorder %s38_s10, %s38_s10 }
   0xc   :  { %p1003_p3 = scmp.ne.s32.totalorder %s38_s10, %s1002_s18  ;;  %p1008_p5 = scmp.lt.s32.totalorder %s1002_s18, %s1002_s18 }
   0xe   :  { %p1009_p6 = por %p1008_p5, %p1007_p4 }
  0x10   :  { %p1010_p7 = pnand %p1009_p6, %p1003_p3 }
  0x12   :  { %1013 = shalt.err (!%p1010_p7)
}
  0x13   :  { %s1135_s19 = smov 384   ;;  %s1136_s20 = smov 24  }
  0x14   :  { %43 = dma.hbm_to_vmem [thread:$0]  %s1327_s2, 6144, %s38_s10, [#allocation8], %s1135_s19, %s1135_s19, %s1136_s20  }
  0x15   :  { %s1137_s23 = smov [#allocation4]   ;;  %s1138_s25 = smov [#allocation9]  }
  0x16   :  { %s26_s24 = sshll.u32 %s1137_s23, 4  ;;  %s49_s26 = sshll.u32 %s1138_s25, 4  ;;  %s27_s24 = int_to_ptr.vmem [resolvable:$true] %s26_s24  ;;  %s50_s26 = int_to_ptr.vmem [resolvable:$true] %s49_s26 }
  0x17   :  { %s1014_s29 = scalar_lea.hbm %s1325_s0, 128 }
  0x18   :  { %p1015_p8 = scmp.ne.s32.totalorder %s1325_s0, %s1014_s29  ;;  %p1018_p9 = scmp.lt.u32.totalorder %s1014_s29, %s1325_s0 }
  0x1a   :  { %p1020_p10 = pnand %p1018_p9, %p1015_p8 }
  0x1c   :  { %1023 = shalt.err (!%p1020_p10)
}
  0x1d   :  { %s1024_s2 = scalar_lea.vmem %s27_s24, 128  ;;  %p1029_p12 = scmp.lt.s32.totalorder %s27_s24, %s27_s24 }
  0x1e   :  { %p1025_p11 = scmp.ne.s32.totalorder %s27_s24, %s1024_s2  ;;  %p1030_p13 = scmp.lt.s32.totalorder %s1024_s2, %s1024_s2 }
  0x20   :  { %p1031_p0 = por %p1030_p13, %p1029_p12 }
  0x22   :  { %p1032_p1 = pnand %p1031_p0, %p1025_p11 }
  0x24   :  { %1035 = shalt.err (!%p1032_p1)
}
  0x25   :  { %29 = dma.hbm_to_vmem [thread:$0]  %s1325_s0, 128, %s27_s24, [#allocation5]  }
  0x26   :  { %s1036_s17 = scalar_lea.hbm %s1328_s3, 6144 }
  0x27   :  { %p1037_p2 = scmp.ne.s32.totalorder %s1328_s3, %s1036_s17  ;;  %p1040_p3 = scmp.lt.u32.totalorder %s1036_s17, %s1328_s3 }
  0x29   :  { %p1042_p4 = pnand %p1040_p3, %p1037_p2 }
  0x2b   :  { %1045 = shalt.err (!%p1042_p4)
}
  0x2c   :  { %s1046_s25 = scalar_lea.vmem %s50_s26, 6144  ;;  %p1051_p6 = scmp.lt.s32.totalorder %s50_s26, %s50_s26 }
  0x2d   :  { %p1047_p5 = scmp.ne.s32.totalorder %s50_s26, %s1046_s25  ;;  %p1052_p7 = scmp.lt.s32.totalorder %s1046_s25, %s1046_s25 }
  0x2f   :  { %p1053_p8 = por %p1052_p7, %p1051_p6 }
  0x31   :  { %p1054_p9 = pnand %p1053_p8, %p1047_p5 }
  0x33   :  { %1057 = shalt.err (!%p1054_p9)
}
  0x34   :  { %55 = dma.hbm_to_vmem [thread:$0]  %s1328_s3, 6144, %s50_s26, [#allocation8], %s1135_s19, %s1135_s19, %s1136_s20  }
  0x35   :  { %s1139_s27 = smov [#allocation10]   ;;  %s1058_s11 = scalar_lea.hbm %s1331_s6, 2048 }
  0x36   :  { %s65_s28 = sshll.u32 %s1139_s27, 4  ;;  %p1059_p10 = scmp.ne.s32.totalorder %s1331_s6, %s1058_s11  ;;  %s66_s28 = int_to_ptr.vmem [resolvable:$true] %s65_s28 }
  0x37   :  { %p1062_p11 = scmp.lt.u32.totalorder %s1058_s11, %s1331_s6 }
  0x39   :  { %p1064_p12 = pnand %p1062_p11, %p1059_p10 }
  0x3b   :  { %1067 = shalt.err (!%p1064_p12)
}
  0x3c   :  { %s1068_s14 = scalar_lea.vmem %s66_s28, 2048  ;;  %p1073_p0 = scmp.lt.s32.totalorder %s66_s28, %s66_s28 }
  0x3d   :  { %p1069_p13 = scmp.ne.s32.totalorder %s66_s28, %s1068_s14  ;;  %p1074_p1 = scmp.lt.s32.totalorder %s1068_s14, %s1068_s14 }
  0x3f   :  { %p1075_p2 = por %p1074_p1, %p1073_p0 }
  0x41   :  { %p1076_p3 = pnand %p1075_p2, %p1069_p13 }
  0x43   :  { %1079 = shalt.err (!%p1076_p3)
}
  0x44   :  { %s1140_s3 = smov 128   ;;  %s1141_s19 = smov 8  }
  0x45   :  { %71 = dma.hbm_to_vmem [thread:$0]  %s1331_s6, 2048, %s66_s28, [#allocation11], %s1140_s3, %s1140_s3, %s1141_s19  }
  0x46   :  { %1124 = dma.done.wait [#allocation5], 128  }
  0x47   :  { %1125 = vsyncadd [#allocation5], 4294967168 }
  0x48   :  { %1126 = dma.done.wait [#allocation8], 12288  }
  0x49   :  { %1127 = vsyncadd [#allocation8], 4294955008 }
  0x4a   :  { %1128 = dma.done.wait [#allocation11], 2048  }
  0x4b   :  { %1129 = vsyncadd [#allocation11], 4294965248  ;;  %v1142_v0 = vmov 0.0|0.0   ;;  %v1143_v1 = vmov 0.0   ;;  %vm1144_vm0 = vmmov 0   ;;  %v88_v2 = vld [vmem:[#allocation7 + $0x8] sm:$0xff] }
  0x4c   :  { %861 = vmatprep.subr.bf16.mxu1 %v1142_v0  ;;  %216 = vmatprep.mubr.f32.mxu0 %v1143_v1  ;;  %296 = vst [vmem:[#allocation3] sm:$0xff] %v1143_v1  ;;  %v91_v3 = vld [vmem:[#allocation7 + $0x20] sm:$0xff]  ;;  %v90_v6 = vld [vmem:[#allocation7 + $0x18] sm:$0xff]  ;;  %v89_v7 = vld [vmem:[#allocation7 + $0x10] sm:$0xff]  ;;  %s1145_s21 = smov [#allocation13]  }
  0x4d   :  { %756 = vmatprep.mubr.msk.f32.mxu1 %vm1144_vm0, %v1143_v1  ;;  %v87_v4 = vld [vmem:[#allocation7] sm:$0xff]  ;;  %v829_v5 = vpack.c.bf16 %v91_v3, %v88_v2  ;;  %v92_v8 = vld [vmem:[#allocation7 + $0x28] sm:$0xff]  ;;  %v94_v11 = vld [vmem:[#allocation7 + $0x38] sm:$0xff]  ;;  %s655_s22 = sshll.u32 %s1145_s21, 4  ;;  %s656_s22 = int_to_ptr.vmem [resolvable:$true] %s655_s22 }
  0x4e   :  { %v831_v9 = vpack.c.bf16 %v90_v6, %v87_v4  ;;  %v862_v10 = vpack.c.bf16 %v92_v8, %v89_v7  ;;  %v97_v12 = vld [vmem:[#allocation7 + $0x50] sm:$0xff]  ;;  %v96_v15 = vld [vmem:[#allocation7 + $0x48] sm:$0xff]  ;;  %v95_v16 = vld [vmem:[#allocation7 + $0x40] sm:$0xff]  ;;  %s1080_s23 = scalar_lea.vmem %s656_s22, 16  ;;  %s1084_s25 = scalar_lea.vmem %s656_s22, 32 }
  0x4f   :  { %v93_v13 = vld [vmem:[#allocation7 + $0x30] sm:$0xff]  ;;  %830 = vmatprep.subr.bf16.mxu0 %v829_v5  ;;  %v833_v14 = vpack.c.bf16 %v97_v12, %v94_v11  ;;  %v98_v17 = vld [vmem:[#allocation7 + $0x58] sm:$0xff]  ;;  %v100_v20 = vld [vmem:[#allocation7 + $0x68] sm:$0xff]  ;;  %p1081_p4 = scmp.ne.s32.totalorder %s656_s22, %s1080_s23  ;;  %p1085_p5 = scmp.lt.s32.totalorder %s656_s22, %s656_s22 }
  0x50   :  { %832 = vmatpush1.bf16.msra.mxu0 %v831_v9  ;;  %863 = vmatpush3.bf16.msra.mxu1 %v862_v10  ;;  %v835_v18 = vpack.c.bf16 %v96_v15, %v93_v13  ;;  %v865_v19 = vpack.c.bf16 %v98_v17, %v95_v16  ;;  %v103_v21 = vld [vmem:[#allocation7 + $0x80] sm:$0xff]  ;;  %v102_v24 = vld [vmem:[#allocation7 + $0x78] sm:$0xff]  ;;  %v101_v25 = vld [vmem:[#allocation7 + $0x70] sm:$0xff]  ;;  %p1086_p6 = scmp.lt.s32.totalorder %s1084_s25, %s1080_s23 }
  0x51   :  { %v99_v22 = vld [vmem:[#allocation7 + $0x60] sm:$0xff]  ;;  %834 = vmatprep.subr.bf16.mxu0 %v833_v14  ;;  %864 = vmatprep.subr.bf16.mxu1 %v1142_v0  ;;  %v837_v23 = vpack.c.bf16 %v103_v21, %v100_v20  ;;  %v104_v26 = vld [vmem:[#allocation7 + $0x88] sm:$0xff]  ;;  %v106_v27 = vld [vmem:[#allocation7 + $0x98] sm:$0xff] }
  0x52   :  { %v109_v28 = vld [vmem:[#allocation7 + $0xb0] sm:$0xff]  ;;  %v839_v29 = vpack.c.bf16 %v102_v24, %v99_v22  ;;  %v868_v30 = vpack.c.bf16 %v104_v26, %v101_v25  ;;  %v108_v33 = vld [vmem:[#allocation7 + $0xa8] sm:$0xff]  ;;  %v107_v34 = vld [vmem:[#allocation7 + $0xa0] sm:$0xff]  ;;  %p1087_p7 = por %p1086_p6, %p1085_p5 }
  0x53   :  { %v105_v31 = vld [vmem:[#allocation7 + $0x90] sm:$0xff]  ;;  %v841_v32 = vpack.c.bf16 %v109_v28, %v106_v27  ;;  %v110_v35 = vld [vmem:[#allocation7 + $0xb8] sm:$0xff]  ;;  %v112_v36 = vld [vmem:[#allocation7 + $0xc8] sm:$0xff] }
  0x54   :  { %836 = vmatpush1.bf16.msra.mxu0 %v835_v18  ;;  %866 = vmatpush3.bf16.msra.mxu1 %v865_v19  ;;  %v115_v37 = vld [vmem:[#allocation7 + $0xe0] sm:$0xff]  ;;  %v843_v38 = vpack.c.bf16 %v108_v33, %v105_v31  ;;  %v871_v39 = vpack.c.bf16 %v110_v35, %v107_v34  ;;  %v114_v42 = vld [vmem:[#allocation7 + $0xd8] sm:$0xff]  ;;  %v113_v43 = vld [vmem:[#allocation7 + $0xd0] sm:$0xff]  ;;  %p1088_p8 = pnand %p1087_p7, %p1081_p4 }
  0x55   :  { %838 = vmatprep.subr.bf16.mxu0 %v837_v23  ;;  %867 = vmatprep.subr.bf16.mxu1 %v1142_v0  ;;  %v111_v40 = vld [vmem:[#allocation7 + $0xc0] sm:$0xff]  ;;  %v845_v41 = vpack.c.bf16 %v115_v37, %v112_v36  ;;  %v116_v44 = vld [vmem:[#allocation7 + $0xe8] sm:$0xff]  ;;  %v118_v45 = vld [vmem:[#allocation7 + $0xf8] sm:$0xff] }
  0x56   :  { %v121_v46 = vld [vmem:[#allocation7 + $0x110] sm:$0xff]  ;;  %v847_v47 = vpack.c.bf16 %v114_v42, %v111_v40  ;;  %v874_v48 = vpack.c.bf16 %v116_v44, %v113_v43  ;;  %v120_v51 = vld [vmem:[#allocation7 + $0x108] sm:$0xff]  ;;  %v119_v52 = vld [vmem:[#allocation7 + $0x100] sm:$0xff] }
  0x57   :  { %v117_v49 = vld [vmem:[#allocation7 + $0xf0] sm:$0xff]  ;;  %v849_v50 = vpack.c.bf16 %v121_v46, %v118_v45  ;;  %v122_v53 = vld [vmem:[#allocation7 + $0x118] sm:$0xff]  ;;  %v124_v54 = vld [vmem:[#allocation7 + $0x128] sm:$0xff] }
  0x58   :  { %840 = vmatpush1.bf16.msra.mxu0 %v839_v29  ;;  %869 = vmatpush3.bf16.msra.mxu1 %v868_v30  ;;  %v127_v55 = vld [vmem:[#allocation7 + $0x140] sm:$0xff]  ;;  %v851_v56 = vpack.c.bf16 %v120_v51, %v117_v49  ;;  %v877_v57 = vpack.c.bf16 %v122_v53, %v119_v52  ;;  %v126_v60 = vld [vmem:[#allocation7 + $0x138] sm:$0xff]  ;;  %v125_v61 = vld [vmem:[#allocation7 + $0x130] sm:$0xff] }
  0x59   :  { %842 = vmatprep.subr.bf16.mxu0 %v841_v32  ;;  %870 = vmatprep.subr.bf16.mxu1 %v1142_v0  ;;  %v123_v58 = vld [vmem:[#allocation7 + $0x120] sm:$0xff]  ;;  %v853_v59 = vpack.c.bf16 %v127_v55, %v124_v54  ;;  %v128_v62 = vld [vmem:[#allocation7 + $0x148] sm:$0xff]  ;;  %v130_v63 = vld [vmem:[#allocation7 + $0x158] sm:$0xff] }
  0x5a   :  { %v133_v2 = vld [vmem:[#allocation7 + $0x170] sm:$0xff]  ;;  %v855_v3 = vpack.c.bf16 %v126_v60, %v123_v58  ;;  %v880_v4 = vpack.c.bf16 %v128_v62, %v125_v61  ;;  %v132_v7 = vld [vmem:[#allocation7 + $0x168] sm:$0xff]  ;;  %v131_v8 = vld [vmem:[#allocation7 + $0x160] sm:$0xff] }
  0x5b   :  { %v129_v5 = vld [vmem:[#allocation7 + $0x150] sm:$0xff]  ;;  %v857_v6 = vpack.c.bf16 %v133_v2, %v130_v63  ;;  %v134_v9 = vld [vmem:[#allocation7 + $0x178] sm:$0xff]  ;;  %v298_v10 = vld [vmem:[#allocation9 + $0x8] sm:$0xff] }
  0x5c   :  { %844 = vmatpush1.bf16.msra.mxu0 %v843_v38  ;;  %872 = vmatpush3.bf16.msra.mxu1 %v871_v39  ;;  %v301_v11 = vld [vmem:[#allocation9 + $0x20] sm:$0xff]  ;;  %v859_v12 = vpack.c.bf16 %v132_v7, %v129_v5  ;;  %v883_v13 = vpack.c.bf16 %v134_v9, %v131_v8  ;;  %v300_v16 = vld [vmem:[#allocation9 + $0x18] sm:$0xff]  ;;  %v299_v17 = vld [vmem:[#allocation9 + $0x10] sm:$0xff] }
  0x5d   :  { %846 = vmatprep.subr.bf16.mxu0 %v845_v41  ;;  %873 = vmatprep.subr.bf16.mxu1 %v1142_v0  ;;  %v297_v14 = vld [vmem:[#allocation9] sm:$0xff]  ;;  %v885_v15 = vpack.c.bf16 %v301_v11, %v298_v10  ;;  %v302_v18 = vld [vmem:[#allocation9 + $0x28] sm:$0xff]  ;;  %v304_v19 = vld [vmem:[#allocation9 + $0x38] sm:$0xff] }
  0x5e   :  { %v307_v20 = vld [vmem:[#allocation9 + $0x50] sm:$0xff]  ;;  %v86_v21 = vld [vmem:[#allocation4] sm:$0xff]  ;;  %v887_v22 = vpack.c.bf16 %v300_v16, %v297_v14  ;;  %v918_v24 = vpack.c.bf16 %v302_v18, %v299_v17  ;;  %v306_v26 = vld [vmem:[#allocation9 + $0x48] sm:$0xff] }
  0x5f   :  { %v303_v23 = vld [vmem:[#allocation9 + $0x30] sm:$0xff]  ;;  %v889_v25 = vpack.c.bf16 %v307_v20, %v304_v19  ;;  %v305_v27 = vld [vmem:[#allocation9 + $0x40] sm:$0xff]  ;;  %v308_v28 = vld [vmem:[#allocation9 + $0x58] sm:$0xff] }
  0x60   :  { %848 = vmatpush1.bf16.msra.mxu0 %v847_v47  ;;  %875 = vmatpush3.bf16.msra.mxu1 %v874_v48  ;;  %v310_v29 = vld [vmem:[#allocation9 + $0x68] sm:$0xff]  ;;  %v313_v30 = vld [vmem:[#allocation9 + $0x80] sm:$0xff]  ;;  %v891_v31 = vpack.c.bf16 %v306_v26, %v303_v23  ;;  %v921_v33 = vpack.c.bf16 %v308_v28, %v305_v27  ;;  %v312_v35 = vld [vmem:[#allocation9 + $0x78] sm:$0xff] }
  0x61   :  { %850 = vmatprep.subr.bf16.mxu0 %v849_v50  ;;  %876 = vmatprep.subr.bf16.mxu1 %v1142_v0  ;;  %v309_v32 = vld [vmem:[#allocation9 + $0x60] sm:$0xff]  ;;  %v893_v34 = vpack.c.bf16 %v313_v30, %v310_v29  ;;  %v311_v36 = vld [vmem:[#allocation9 + $0x70] sm:$0xff]  ;;  %v314_v37 = vld [vmem:[#allocation9 + $0x88] sm:$0xff] }
  0x62   :  { %v316_v38 = vld [vmem:[#allocation9 + $0x98] sm:$0xff]  ;;  %v319_v39 = vld [vmem:[#allocation9 + $0xb0] sm:$0xff]  ;;  %v895_v40 = vpack.c.bf16 %v312_v35, %v309_v32  ;;  %v924_v42 = vpack.c.bf16 %v314_v37, %v311_v36  ;;  %v318_v44 = vld [vmem:[#allocation9 + $0xa8] sm:$0xff] }
  0x63   :  { %v315_v41 = vld [vmem:[#allocation9 + $0x90] sm:$0xff]  ;;  %v897_v43 = vpack.c.bf16 %v319_v39, %v316_v38  ;;  %v317_v45 = vld [vmem:[#allocation9 + $0xa0] sm:$0xff]  ;;  %v320_v46 = vld [vmem:[#allocation9 + $0xb8] sm:$0xff] }
  0x64   :  { %852 = vmatpush1.bf16.msra.mxu0 %v851_v56  ;;  %878 = vmatpush3.bf16.msra.mxu1 %v877_v57  ;;  %v322_v47 = vld [vmem:[#allocation9 + $0xc8] sm:$0xff]  ;;  %v325_v48 = vld [vmem:[#allocation9 + $0xe0] sm:$0xff]  ;;  %v899_v49 = vpack.c.bf16 %v318_v44, %v315_v41  ;;  %v927_v51 = vpack.c.bf16 %v320_v46, %v317_v45  ;;  %v324_v53 = vld [vmem:[#allocation9 + $0xd8] sm:$0xff] }
  0x65   :  { %854 = vmatprep.subr.bf16.mxu0 %v853_v59  ;;  %879 = vmatprep.subr.bf16.mxu1 %v1142_v0  ;;  %v321_v50 = vld [vmem:[#allocation9 + $0xc0] sm:$0xff]  ;;  %v901_v52 = vpack.c.bf16 %v325_v48, %v322_v47  ;;  %v323_v54 = vld [vmem:[#allocation9 + $0xd0] sm:$0xff]  ;;  %v326_v55 = vld [vmem:[#allocation9 + $0xe8] sm:$0xff]  ;;  %v137_v47 = vlaneseq }
  0x66   :  { %v328_v56 = vld [vmem:[#allocation9 + $0xf8] sm:$0xff]  ;;  %v331_v57 = vld [vmem:[#allocation9 + $0x110] sm:$0xff]  ;;  %v903_v58 = vpack.c.bf16 %v324_v53, %v321_v50  ;;  %v930_v60 = vpack.c.bf16 %v326_v55, %v323_v54  ;;  %v330_v62 = vld [vmem:[#allocation9 + $0x108] sm:$0xff] }
  0x67   :  { %v327_v59 = vld [vmem:[#allocation9 + $0xf0] sm:$0xff]  ;;  %v905_v61 = vpack.c.bf16 %v331_v57, %v328_v56  ;;  %v329_v63 = vld [vmem:[#allocation9 + $0x100] sm:$0xff]  ;;  %v332_v2 = vld [vmem:[#allocation9 + $0x118] sm:$0xff]  ;;  %v138_v48 = vshrl.u32 %v137_v47, 7 }
  0x68   :  { %856 = vmatpush1.bf16.msra.mxu0 %v855_v3  ;;  %881 = vmatpush3.bf16.msra.mxu1 %v880_v4  ;;  %v334_v3 = vld [vmem:[#allocation9 + $0x128] sm:$0xff]  ;;  %v337_v4 = vld [vmem:[#allocation9 + $0x140] sm:$0xff]  ;;  %v907_v5 = vpack.c.bf16 %v330_v62, %v327_v59  ;;  %v933_v7 = vpack.c.bf16 %v332_v2, %v329_v63  ;;  %v336_v9 = vld [vmem:[#allocation9 + $0x138] sm:$0xff] }
  0x69   :  { %858 = vmatprep.subr.bf16.mxu0 %v857_v6  ;;  %882 = vmatprep.subr.bf16.mxu1 %v1142_v0  ;;  %v333_v6 = vld [vmem:[#allocation9 + $0x120] sm:$0xff]  ;;  %v909_v8 = vpack.c.bf16 %v337_v4, %v334_v3  ;;  %v335_v10 = vld [vmem:[#allocation9 + $0x130] sm:$0xff]  ;;  %v338_v11 = vld [vmem:[#allocation9 + $0x148] sm:$0xff]  ;;  %v147_v50 = vsub.s32 2, %v138_v48 }
  0x6a   :  { %v911_v14 = vpack.c.bf16 %v336_v9, %v333_v6  ;;  %v936_v16 = vpack.c.bf16 %v338_v11, %v335_v10  ;;  %v342_v18 = vld [vmem:[#allocation9 + $0x168] sm:$0xff]  ;;  %v341_v19 = vld [vmem:[#allocation9 + $0x160] sm:$0xff]  ;;  %v344_v20 = vld [vmem:[#allocation9 + $0x178] sm:$0xff] }
  0x6b   :  { %v1277_v23 = vld [vmem:[%s1326_s1] sm:$0x1]  ;;  %v536_v27 = vld [vmem:[#allocation10 + $0x10] sm:$0xff]  ;;  %v538_v30 = vld [vmem:[#allocation10 + $0x20] sm:$0xff] }
  0x6c   :  { %860 = vmatpush1.bf16.msra.mxu0 %v859_v12  ;;  %884 = vmatpush3.bf16.msra.mxu1 %v883_v13  ;;  %v340_v12 = vld [vmem:[#allocation9 + $0x158] sm:$0xff]  ;;  %v343_v13 = vld [vmem:[#allocation9 + $0x170] sm:$0xff]  ;;  %v542_v35 = vld [vmem:[#allocation10 + $0x40] sm:$0xff] }
  0x6d   :  { %886 = vmatprep.subr.bf16.mxu0 %v885_v15  ;;  %917 = vmatprep.subr.bf16.mxu1 %v1142_v0  ;;  %v339_v15 = vld [vmem:[#allocation9 + $0x150] sm:$0xff]  ;;  %v913_v17 = vpack.c.bf16 %v343_v13, %v340_v12  ;;  %v537_v28 = vld [vmem:[#allocation10 + $0x18] sm:$0xff]  ;;  %v543_v36 = vld [vmem:[#allocation10 + $0x48] sm:$0xff] }
  0x6e   :  { %v945_v29 = vpack.c.bf16 %v537_v28, %v536_v27  ;;  %v954_v37 = vpack.c.bf16 %v543_v36, %v542_v35  ;;  %v544_v38 = vld [vmem:[#allocation10 + $0x50] sm:$0xff]  ;;  %v545_v39 = vld [vmem:[#allocation10 + $0x58] sm:$0xff]  ;;  %v546_v41 = vld [vmem:[#allocation10 + $0x60] sm:$0xff] }
  0x6f   :  { %217 = vmatmul.mubr.f32.vlgmr.msra.gmra.mrb[0].mxu0 %v86_v21  ;;  %757 = vmatmul.mubr.f32.vlgmr.msra.gmra.mrb[0].mxu1 %v86_v21  ;;  %v915_v21 = vpack.c.bf16 %v342_v18, %v339_v15  ;;  %v548_v44 = vld [vmem:[#allocation10 + $0x70] sm:$0xff]  ;;  %v549_v45 = vld [vmem:[#allocation10 + $0x78] sm:$0xff] }
  0x70   :  { %888 = vmatpush1.bf16.msra.mxu0 %v887_v22  ;;  %919 = vmatpush3.bf16.msra.mxu1 %v918_v24  ;;  %v939_v22 = vpack.c.bf16 %v344_v20, %v341_v19  ;;  %v534_v24 = vld [vmem:[#allocation10] sm:$0xff]  ;;  %v963_v46 = vpack.c.bf16 %v549_v45, %v548_v44  ;;  %v345_v62 = vld [vmem:[%s1330_s5] sm:$0x7] }
  0x71   :  { %890 = vmatprep.subr.bf16.mxu0 %v889_v25  ;;  %427 = vmatprep.mubr.f32.mxu0 %v1143_v1  ;;  %v535_v25 = vld [vmem:[#allocation10 + $0x8] sm:$0xff] }
  0x72   :  { %920 = vmatprep.subr.bf16.mxu1 %v1142_v0  ;;  %791 = vmatprep.mubr.msk.f32.mxu1 %vm1144_vm0, %v1143_v1  ;;  %v942_v26 = vpack.c.bf16 %v535_v25, %v534_v24 }
  0x74   :  { %892 = vmatpush1.bf16.msra.mxu0 %v891_v31  ;;  %922 = vmatpush3.bf16.msra.mxu1 %v921_v33  ;;  %v539_v31 = vld [vmem:[#allocation10 + $0x28] sm:$0xff]  ;;  %v540_v33 = vld [vmem:[#allocation10 + $0x30] sm:$0xff] }
  0x75   :  { %894 = vmatprep.subr.bf16.mxu0 %v893_v34  ;;  %923 = vmatprep.subr.bf16.mxu1 %v1142_v0  ;;  %v948_v32 = vpack.c.bf16 %v539_v31, %v538_v30 }
  0x78   :  { %896 = vmatpush1.bf16.msra.mxu0 %v895_v40  ;;  %925 = vmatpush3.bf16.msra.mxu1 %v924_v42  ;;  %v957_v40 = vpack.c.bf16 %v545_v39, %v544_v38  ;;  %v547_v42 = vld [vmem:[#allocation10 + $0x68] sm:$0xff] }
  0x79   :  { %898 = vmatprep.subr.bf16.mxu0 %v897_v43  ;;  %926 = vmatprep.subr.bf16.mxu1 %v1142_v0  ;;  %v960_v43 = vpack.c.bf16 %v547_v42, %v546_v41 }
  0x7c   :  { %900 = vmatpush1.bf16.msra.mxu0 %v899_v49  ;;  %928 = vmatpush3.bf16.msra.mxu1 %v927_v51  ;;  %v139_v49 = vsub.s32 0, %v138_v48  ;;  %v135_v51 = vld [vmem:[%s1329_s4] sm:$0x7] }
  0x7d   :  { %902 = vmatprep.subr.bf16.mxu0 %v901_v52  ;;  %929 = vmatprep.subr.bf16.mxu1 %v1142_v0  ;;  %v143_v52 = vsub.s32 1, %v138_v48  ;;  %v148_v54 = vrot.slane %v135_v51, %v147_v50 }
  0x7e   :  { %v140_v53 = vrot.slane %v135_v51, %v139_v49  ;;  %v351_v63 = vrot.slane %v345_v62, %v139_v49 }
  0x7f   :  { %v144_v55 = vrot.slane %v135_v51, %v143_v52  ;;  %v355_v2 = vrot.slane %v345_v62, %v143_v52 }
  0x80   :  { %904 = vmatpush1.bf16.msra.mxu0 %v903_v58  ;;  %931 = vmatpush3.bf16.msra.mxu1 %v930_v60 }
  0x81   :  { %906 = vmatprep.subr.bf16.mxu0 %v905_v61  ;;  %932 = vmatprep.subr.bf16.mxu1 %v1142_v0 }
  0x84   :  { %908 = vmatpush1.bf16.msra.mxu0 %v907_v5  ;;  %934 = vmatpush3.bf16.msra.mxu1 %v933_v7 }
  0x85   :  { %910 = vmatprep.subr.bf16.mxu0 %v909_v8  ;;  %935 = vmatprep.subr.bf16.mxu1 %v1142_v0 }
  0x88   :  { %912 = vmatpush1.bf16.msra.mxu0 %v911_v14  ;;  %937 = vmatpush3.bf16.msra.mxu1 %v936_v16 }
  0x89   :  { %914 = vmatprep.subr.bf16.mxu0 %v913_v17  ;;  %938 = vmatprep.subr.bf16.mxu1 %v1142_v0  ;;  %v359_v17 = vrot.slane %v345_v62, %v147_v50 }
  0x8c   :  { %916 = vmatpush1.bf16.msra.mxu0 %v915_v21  ;;  %940 = vmatpush3.bf16.msra.mxu1 %v939_v22 }
  0x8d   :  { %941 = vmatprep.subr.bf16.mxu0 %v1142_v0 }
  0x8f   :  { %428 = vmatmul.mubr.f32.vlgmr.msra.gmra.mrb[2].mxu0 %v1277_v23  ;;  %792 = vmatmul.mubr.f32.vlgmr.msra.gmra.mrb[2].mxu1 %v1277_v23 }
  0x90   :  { %826 = vmatprep.mubr.msk.f32.mxu0 %vm1144_vm0, %v1143_v1  ;;  %943 = vmatpush3.bf16.msra.mxu0 %v942_v26  ;;  %v541_v1 = vld [vmem:[#allocation10 + $0x38] sm:$0xff] }
  0x91   :  { %944 = vmatprep.subr.bf16.mxu0 %v1142_v0  ;;  %v951_v34 = vpack.c.bf16 %v541_v1, %v540_v33  ;;  %v672_v33 = vld [vmem:[%s1332_s7] ss:$0 sm:$0xff] }
  0x94   :  { %946 = vmatpush3.bf16.msra.mxu0 %v945_v29 }
  0x95   :  { %947 = vmatprep.subr.bf16.mxu0 %v1142_v0 }
  0x98   :  { %949 = vmatpush3.bf16.msra.mxu0 %v948_v32 }
  0x99   :  { %950 = vmatprep.subr.bf16.mxu0 %v1142_v0 }
  0x9c   :  { %952 = vmatpush3.bf16.msra.mxu0 %v951_v34 }
  0x9d   :  { %953 = vmatprep.subr.bf16.mxu0 %v1142_v0 }
  0xa0   :  { %955 = vmatpush3.bf16.msra.mxu0 %v954_v37 }
  0xa1   :  { %956 = vmatprep.subr.bf16.mxu0 %v1142_v0 }
  0xa4   :  { %958 = vmatpush3.bf16.msra.mxu0 %v957_v40 }
  0xa5   :  { %959 = vmatprep.subr.bf16.mxu0 %v1142_v0 }
  0xa8   :  { %961 = vmatpush3.bf16.msra.mxu0 %v960_v43 }
  0xa9   :  { %962 = vmatprep.subr.bf16.mxu0 %v1142_v0 }
  0xac   :  { %964 = vmatpush3.bf16.msra.mxu0 %v963_v46 }
 0x142   :  { %v218_v56 = vpop.f32.mrb[0].mxu0  ;;  %v289_v57 = vpop.f32.mrb[0].mxu1 }
 0x143   :  { %v219_v58 = vadd.f32 %v218_v56, %v140_v53  ;;  %v220_v59 = vpop.f32.mrb[1].mxu0  ;;  %v290_v60 = vadd.f32 %v289_v57, %v148_v54  ;;  %v758_v61 = vpop.f32.mrb[1].mxu1 }
 0x144   :  { %v221_v0 = vadd.f32 %v220_v59, %v144_v55 }
 0x145   :  { %293 = vst [vmem:[#allocation2] sm:$0xff] %v219_v58  ;;  %295 = vst [vmem:[#allocation2 + $0x10] sm:$0xff] %v290_v60 }
 0x146   :  { %294 = vst [vmem:[#allocation2 + $0x8] sm:$0xff] %v221_v0 }
 0x14d   :  { %v504_v6 = vld [vmem:[#allocation2] ss:$8 sm:$0x7] }
 0x14e   :  { %v513_v11 = vrot.slane %v504_v6, 1  ;;  %v523_v24 = vrot.slane %v504_v6, 2 }
 0x162   :  { %v429_v3 = vpop.f32.mrb[2].mxu0  ;;  %v500_v4 = vpop.f32.mrb[2].mxu1 }
 0x163   :  { %v430_v5 = vadd.f32 %v429_v3, %v351_v63  ;;  %v431_v7 = vpop.f32.mrb[3].mxu0  ;;  %v793_v8 = vpop.f32.mrb[3].mxu1  ;;  %v501_v20 = vadd.f32 %v500_v4, %v359_v17 }
 0x164   :  { %v432_v9 = vadd.f32 %v431_v7, %v355_v2 }
 0x165   :  { %v505_v10 = vadd.f32 %v504_v6, %v430_v5 }
 0x166   :  { %v515_v13 = vadd.f32 %v513_v11, %v432_v9 }
 0x167   :  { %v670_v12 = vmul.f32 -1.442695, %v505_v10 }
 0x168   :  { %v671_v14 = vmul.f32 -1.442695, %v515_v13 }
 0x169   :  { %978 = vpow2.f32 %v670_v12 }
 0x16a   :  { %980 = vpow2.f32 %v671_v14 }
 0x173   :  { %v979_v15 = vpop.eup %978 }
 0x174   :  { %v509_v16 = vadd.f32 1.0, %v979_v15  ;;  %v981_v18 = vpop.eup %980 }
 0x175   :  { %v519_v19 = vadd.f32 1.0, %v981_v18 }
 0x176   :  { %982 = vrcp.f32 %v509_v16 }
 0x177   :  { %984 = vrcp.f32 %v519_v19 }
 0x180   :  { %v983_v21 = vpop.eup %982 }
 0x181   :  { %v522_v22 = vmul.f32 %v983_v21, %v501_v20  ;;  %v985_v26 = vpop.eup %984 }
 0x182   :  { %v527_v27 = vsub.f32 1.0, %v985_v26  ;;  %v529_v29 = vmul.f32 %v985_v26, %v1277_v23 }
 0x183   :  { %v525_v25 = vadd.f32 %v523_v24, %v522_v22 }
 0x185   :  { %986 = vtanh.f32 %v525_v25 }
 0x18f   :  { %v987_v28 = vpop.eup %986 }
 0x190   :  { %v528_v30 = vmul.f32 %v987_v28, %v527_v27 }
 0x192   :  { %v530_v31 = vadd.f32 %v529_v29, %v528_v30 }
 0x194   :  { %531 = vst [vmem:[#allocation3] sm:$0x1] %v530_v31  ;;  %532 = vst [vmem:[#allocation13] sm:$0x1] %v530_v31 }
 0x19b   :  { %v533_v32 = vld [vmem:[#allocation3] sm:$0xff] }
 0x19c   :  { %827 = vmatmul.mubr.f32.vlgmr.msra.gmra.mrb[4].mxu0 %v533_v32 }
 0x26f   :  { %v623_v1 = vpop.f32.mrb[4].mxu0 }
 0x270   :  { %v624_v34 = vadd.f32 %v672_v33, %v623_v1  ;;  %v828_v35 = vpop.f32.mrb[5].mxu0 }
 0x272   :  { %627 = vmax.xlane.f32.xlu0 %v624_v34 }
 0x2ff   :  { %v628_v36 = vpop.xlane.xlu0 %627 }
 0x300   :  { %v629_v37 = vsub.f32 %v624_v34, %v628_v36 }
 0x302   :  { %v630_v38 = vmul.f32 1.442695, %v629_v37 }
 0x304   :  { %988 = vpow2.f32 %v630_v38 }
 0x30e   :  { %v989_v39 = vpop.eup %988 }
 0x30f   :  { %632 = vadd.xlane.f32.xlu0 %v989_v39 }
 0x310   :  { %1091 = shalt.err (!%p1088_p8)
}
 0x311   :  { %s1092_s24 = scalar_lea.hbm %s1334_s9, 16 }
 0x312   :  { %p1093_p9 = scmp.ne.s32.totalorder %s1334_s9, %s1092_s24  ;;  %p1096_p10 = scmp.lt.u32.totalorder %s1092_s24, %s1334_s9 }
 0x314   :  { %p1098_p11 = pnand %p1096_p10, %p1093_p9 }
 0x316   :  { %1101 = shalt.err (!%p1098_p11)
}
 0x317   :  { %658 = dma.vmem_to_hbm [thread:$0]  %s656_s22, 16, %s1334_s9, [#allocation14]  }
 0x318   :  { %s1146_s13 = smov [#allocation12]  }
 0x319   :  { %s645_s2 = sshll.u32 %s1146_s13, 4  ;;  %s646_s2 = int_to_ptr.vmem [resolvable:$true] %s645_s2 }
 0x31a   :  { %s1102_s10 = scalar_lea.vmem %s646_s2, 128  ;;  %p1107_p13 = scmp.lt.s32.totalorder %s646_s2, %s646_s2 }
 0x31b   :  { %p1103_p12 = scmp.ne.s32.totalorder %s646_s2, %s1102_s10  ;;  %p1108_p0 = scmp.lt.s32.totalorder %s1102_s10, %s1102_s10 }
 0x31d   :  { %p1109_p1 = por %p1108_p0, %p1107_p13 }
 0x31f   :  { %p1110_p2 = pnand %p1109_p1, %p1103_p12 }
 0x39c   :  { %v633_v23 = vpop.xlane.xlu0 %632 }
 0x39d   :  { %990 = vlog2.f32 %v633_v23 }
 0x3a7   :  { %v991_v40 = vpop.eup %990 }
 0x3a8   :  { %v635_v41 = vmul.f32 0.6931472, %v991_v40 }
 0x3aa   :  { %v636_v42 = vadd.f32 %v635_v41, %v628_v36 }
 0x3ac   :  { %v637_v43 = vsub.f32 %v624_v34, %v636_v42 }
 0x3ae   :  { %638 = vst [vmem:[#allocation12] sm:$0xff] %v637_v43 }
 0x3af   :  { %1113 = shalt.err (!%p1110_p2)
}
 0x3b0   :  { %s1114_s9 = scalar_lea.hbm %s1333_s8, 128 }
 0x3b1   :  { %p1115_p3 = scmp.ne.s32.totalorder %s1333_s8, %s1114_s9  ;;  %p1118_p4 = scmp.lt.u32.totalorder %s1114_s9, %s1333_s8 }
 0x3b3   :  { %p1120_p5 = pnand %p1118_p4, %p1115_p3 }
 0x3b5   :  { %1123 = shalt.err (!%p1120_p5)
}
 0x3b6   :  { %648 = dma.vmem_to_hbm [thread:$0]  %s646_s2, 128, %s1333_s8, [#allocation6]  }
 0x3b7   :  { %1130 = dma.done.wait [#allocation6], 128  }
 0x3b8   :  { %1131 = vsyncadd [#allocation6], 4294967168 }
 0x3b9   :  { %1132 = dma.done.wait [#allocation14], 16  }
 0x3ba   :  { %1133 = vsyncadd [#allocation14], 4294967280 }
 0x3bb   :  { %665 = vsyncpa [#allocation5], 1 }
 0x3bc   :  { %666 = vsyncpa [#allocation8], 1 }
 0x3bd   :  { %667 = vsyncpa [#allocation11], 1 }
 0x3be   :  { %668 = vsyncpa [#allocation6], 1 }
 0x3bf   :  { %669 = vsyncpa [#allocation14], 1 }

</bundles_post_ra>
